<compile_context>
chip_gen: v5e
topology: v5e:2x2
jax: 0.10.0
libtpu: 0.0.40
codegen_flags: <defaults>
</compile_context>

<pallas_src>
import math

import jax
import jax.numpy as jnp
from jax.experimental import pallas as pl
from jax.experimental.pallas import tpu as pltpu

LANE = 128  # vreg lane width; lane-dense output slab size


def mlp_kernel(x_ref,
               w1_ref, b1_ref,
               w2_ref, b2_ref,
               w3_ref, b3_ref,
               w4_ref, b4_ref,
               o_ref):
    def layer(x_f32, w_ref, b_ref, relu):
        # bf16 into the MXU, f32 accumulation; bias add / ReLU in f32 on VPU.
        y = jnp.dot(x_f32.astype(jnp.bfloat16), w_ref[...],
                    preferred_element_type=jnp.float32) + b_ref[...]
        return jnp.maximum(y, 0.0) if relu else y

    h = layer(x_ref[...], w1_ref, b1_ref, True)
    h = layer(h, w2_ref, b2_ref, True)
    h = layer(h, w3_ref, b3_ref, True)
    o_ref[...] = layer(h, w4_ref, b4_ref, False).astype(o_ref.dtype)


def _round_up(x, m):
    return ((x + m - 1) // m) * m


def mlp_forward(state, params, action_dim, *, block_m=512):
    """state: (B, state_dim) f32.  params: bf16 weights (in,out), f32 biases (1,out).

    The last layer's weights/bias/output are padded to LANE (128) columns;
    the real `action_dim` columns are sliced off after the kernel.
    """
    B, state_dim = state.shape
    out_pad = params["w4"].shape[1]  # lane-dense padded action dim (128)

    # Batch tile: multiple of 8 sublanes, capped by (padded) batch size.
    bm = min(block_m, _round_up(B, 8))
    bm = _round_up(bm, 8)
    Bp = _round_up(B, bm)
    if Bp != B:
        state = jnp.pad(state, ((0, Bp - B), (0, 0)))

    grid = (Bp // bm,)

    def tiled(shape):
        return pl.BlockSpec(shape, lambda i: (i, 0))

    def resident(arr):
        # Full-array block; block index constant across the grid -> stays in VMEM.
        return pl.BlockSpec(arr.shape, lambda i: (0, 0))

    out_padded = pl.pallas_call(
        mlp_kernel,
        out_shape=jax.ShapeDtypeStruct((Bp, out_pad), jnp.float32),
        grid=grid,
        in_specs=[
            tiled((bm, state_dim)),
            resident(params["w1"]), resident(params["b1"]),
            resident(params["w2"]), resident(params["b2"]),
            resident(params["w3"]), resident(params["b3"]),
            resident(params["w4"]), resident(params["b4"]),
        ],
        out_specs=tiled((bm, out_pad)),
        compiler_params=pltpu.CompilerParams(
            dimension_semantics=("parallel",)),
    )(state,
      params["w1"], params["b1"],
      params["w2"], params["b2"],
      params["w3"], params["b3"],
      params["w4"], params["b4"])

    return out_padded[:B, :action_dim]


def init_params(key, state_dim, hide_dim, action_dim, out_pad=LANE):
    """Mimics torch.nn.Linear default init U(-1/sqrt(fan_in), +1/sqrt(fan_in)).

    Weights are (in, out) and cast to bf16 (MXU inputs); biases stay f32.
    The last layer is zero-padded from action_dim -> out_pad columns so the
    kernel's output is lane-dense (padded lanes compute exact zeros).
    """
    dims = [(state_dim, hide_dim, hide_dim),
            (hide_dim, hide_dim, hide_dim),
            (hide_dim, hide_dim, hide_dim),
            (hide_dim, action_dim, out_pad)]
    params = {}
    keys = jax.random.split(key, 2 * len(dims))
    for i, (fan_in, fan_out, pad_out) in enumerate(dims):
        bound = 1.0 / math.sqrt(fan_in)
        w = jax.random.uniform(keys[2 * i], (fan_in, fan_out),
                               jnp.float32, -bound, bound)
        b = jax.random.uniform(keys[2 * i + 1], (1, fan_out),
                               jnp.float32, -bound, bound)
        if pad_out != fan_out:
            w = jnp.pad(w, ((0, 0), (0, pad_out - fan_out)))
            b = jnp.pad(b, ((0, 0), (0, pad_out - fan_out)))
        params[f"w{i+1}"] = w.astype(jnp.bfloat16)
        params[f"b{i+1}"] = b  # f32 biases: VPU work stays f32 (v5e-safe)
    return params


def mlp_reference(state, params, action_dim):
    """Pure-JAX reference replicating the kernel's bf16-in / f32-acc math."""
    def lin(x, w, b):
        return jnp.dot(x.astype(jnp.bfloat16), w,
                       preferred_element_type=jnp.float32) + b

    h = jnp.maximum(lin(state, params["w1"], params["b1"]), 0.0)
    h = jnp.maximum(lin(h, params["w2"], params["b2"]), 0.0)
    h = jnp.maximum(lin(h, params["w3"], params["b3"]), 0.0)
    return lin(h, params["w4"], params["b4"])[:, :action_dim]


if __name__ == "__main__":
    # cfg: DQN_state_dim=16, hide_dim=32, DQN_action_dim=4
    # Small batch, but block_m=8 so the batch grid (4 steps) is exercised.
    B, STATE_DIM, HIDE_DIM, ACTION_DIM = 32, 16, 32, 4

    key = jax.random.PRNGKey(0)
    k_params, k_state = jax.random.split(key)
    params = init_params(k_params, STATE_DIM, HIDE_DIM, ACTION_DIM)
    state = jax.random.normal(k_state, (B, STATE_DIM), jnp.float32)

    out = mlp_forward(state, params, ACTION_DIM, block_m=8)
    out = jax.block_until_ready(out)

    ref = mlp_reference(state, params, ACTION_DIM)
    assert out.shape == (B, ACTION_DIM)
    assert jnp.allclose(out, ref, atol=2e-3, rtol=2e-3), (
        float(jnp.max(jnp.abs(out - ref))))

    print("KERNEL_OK")
</pallas_src>

<mosaic_0001>
module attributes {stable_mosaic.version = 11 : i64} {
  func.func @mlp_kernel(%arg0: i32, %arg1: memref<8x16xf32, #tpu.memory_space<vmem>>, %arg2: memref<16x32xbf16, #tpu.memory_space<vmem>>, %arg3: memref<1x32xf32, #tpu.memory_space<vmem>>, %arg4: memref<32x32xbf16, #tpu.memory_space<vmem>>, %arg5: memref<1x32xf32, #tpu.memory_space<vmem>>, %arg6: memref<32x32xbf16, #tpu.memory_space<vmem>>, %arg7: memref<1x32xf32, #tpu.memory_space<vmem>>, %arg8: memref<32x128xbf16, #tpu.memory_space<vmem>>, %arg9: memref<1x128xf32, #tpu.memory_space<vmem>>, %arg10: memref<8x128xf32, #tpu.memory_space<vmem>>) attributes {dimension_semantics = [#tpu.dimension_semantics<parallel>], iteration_bounds = array<i64: 4>, scalar_prefetch = 0 : i64, scratch_operands = 0 : i64, tpu.core_type = #tpu.core_type<tc>, window_params = [{transform_indices = @transform_0, window_bounds = array<i64: 8, 16>}, {pipeline_mode = #tpu.pipeline_mode<synchronous>, transform_indices = @transform_1, window_bounds = array<i64: 16, 32>}, {pipeline_mode = #tpu.pipeline_mode<synchronous>, transform_indices = @transform_2, window_bounds = array<i64: 1, 32>}, {pipeline_mode = #tpu.pipeline_mode<synchronous>, transform_indices = @transform_3, window_bounds = array<i64: 32, 32>}, {pipeline_mode = #tpu.pipeline_mode<synchronous>, transform_indices = @transform_4, window_bounds = array<i64: 1, 32>}, {pipeline_mode = #tpu.pipeline_mode<synchronous>, transform_indices = @transform_5, window_bounds = array<i64: 32, 32>}, {pipeline_mode = #tpu.pipeline_mode<synchronous>, transform_indices = @transform_6, window_bounds = array<i64: 1, 32>}, {pipeline_mode = #tpu.pipeline_mode<synchronous>, transform_indices = @transform_7, window_bounds = array<i64: 32, 128>}, {pipeline_mode = #tpu.pipeline_mode<synchronous>, transform_indices = @transform_8, window_bounds = array<i64: 1, 128>}, {transform_indices = @transform_9, window_bounds = array<i64: 8, 128>}]} {
    %c0 = arith.constant 0 : index
    %c0_0 = arith.constant 0 : index
    %0 = vector.load %arg1[%c0, %c0_0] : memref<8x16xf32, #tpu.memory_space<vmem>>, vector<8x16xf32>
    %1 = arith.truncf %0 : vector<8x16xf32> to vector<8x16xbf16>
    %c0_1 = arith.constant 0 : index
    %c0_2 = arith.constant 0 : index
    %2 = vector.load %arg2[%c0_1, %c0_2] : memref<16x32xbf16, #tpu.memory_space<vmem>>, vector<16x32xbf16>
    %cst = arith.constant dense<0.000000e+00> : vector<8x32xf32>
    %3 = tpu.matmul %1, %2, %cst {dimension_numbers = #tpu.dot_dimension_numbers<[1], [0], [0], [1], [0, 0, 1, 1], [], []>} : vector<8x16xbf16>, vector<16x32xbf16>, vector<8x32xf32> -> vector<8x32xf32>
    %c0_3 = arith.constant 0 : index
    %c0_4 = arith.constant 0 : index
    %4 = vector.load %arg3[%c0_3, %c0_4] : memref<1x32xf32, #tpu.memory_space<vmem>>, vector<1x32xf32>
    %5 = vector.broadcast %4 : vector<1x32xf32> to vector<8x32xf32>
    %6 = arith.addf %3, %5 : vector<8x32xf32>
    %cst_5 = arith.constant 0.000000e+00 : f32
    %7 = vector.broadcast %cst_5 : f32 to vector<8x32xf32>
    %8 = arith.maximumf %6, %7 : vector<8x32xf32>
    %9 = arith.truncf %8 : vector<8x32xf32> to vector<8x32xbf16>
    %c0_6 = arith.constant 0 : index
    %c0_7 = arith.constant 0 : index
    %10 = vector.load %arg4[%c0_6, %c0_7] : memref<32x32xbf16, #tpu.memory_space<vmem>>, vector<32x32xbf16>
    %cst_8 = arith.constant dense<0.000000e+00> : vector<8x32xf32>
    %11 = tpu.matmul %9, %10, %cst_8 {dimension_numbers = #tpu.dot_dimension_numbers<[1], [0], [0], [1], [0, 0, 1, 1], [], []>} : vector<8x32xbf16>, vector<32x32xbf16>, vector<8x32xf32> -> vector<8x32xf32>
    %c0_9 = arith.constant 0 : index
    %c0_10 = arith.constant 0 : index
    %12 = vector.load %arg5[%c0_9, %c0_10] : memref<1x32xf32, #tpu.memory_space<vmem>>, vector<1x32xf32>
    %13 = vector.broadcast %12 : vector<1x32xf32> to vector<8x32xf32>
    %14 = arith.addf %11, %13 : vector<8x32xf32>
    %cst_11 = arith.constant 0.000000e+00 : f32
    %15 = vector.broadcast %cst_11 : f32 to vector<8x32xf32>
    %16 = arith.maximumf %14, %15 : vector<8x32xf32>
    %17 = arith.truncf %16 : vector<8x32xf32> to vector<8x32xbf16>
    %c0_12 = arith.constant 0 : index
    %c0_13 = arith.constant 0 : index
    %18 = vector.load %arg6[%c0_12, %c0_13] : memref<32x32xbf16, #tpu.memory_space<vmem>>, vector<32x32xbf16>
    %cst_14 = arith.constant dense<0.000000e+00> : vector<8x32xf32>
    %19 = tpu.matmul %17, %18, %cst_14 {dimension_numbers = #tpu.dot_dimension_numbers<[1], [0], [0], [1], [0, 0, 1, 1], [], []>} : vector<8x32xbf16>, vector<32x32xbf16>, vector<8x32xf32> -> vector<8x32xf32>
    %c0_15 = arith.constant 0 : index
    %c0_16 = arith.constant 0 : index
    %20 = vector.load %arg7[%c0_15, %c0_16] : memref<1x32xf32, #tpu.memory_space<vmem>>, vector<1x32xf32>
    %21 = vector.broadcast %20 : vector<1x32xf32> to vector<8x32xf32>
    %22 = arith.addf %19, %21 : vector<8x32xf32>
    %cst_17 = arith.constant 0.000000e+00 : f32
    %23 = vector.broadcast %cst_17 : f32 to vector<8x32xf32>
    %24 = arith.maximumf %22, %23 : vector<8x32xf32>
    %25 = arith.truncf %24 : vector<8x32xf32> to vector<8x32xbf16>
    %c0_18 = arith.constant 0 : index
    %c0_19 = arith.constant 0 : index
    %26 = vector.load %arg8[%c0_18, %c0_19] : memref<32x128xbf16, #tpu.memory_space<vmem>>, vector<32x128xbf16>
    %cst_20 = arith.constant dense<0.000000e+00> : vector<8x128xf32>
    %27 = tpu.matmul %25, %26, %cst_20 {dimension_numbers = #tpu.dot_dimension_numbers<[1], [0], [0], [1], [0, 0, 1, 1], [], []>} : vector<8x32xbf16>, vector<32x128xbf16>, vector<8x128xf32> -> vector<8x128xf32>
    %c0_21 = arith.constant 0 : index
    %c0_22 = arith.constant 0 : index
    %28 = vector.load %arg9[%c0_21, %c0_22] : memref<1x128xf32, #tpu.memory_space<vmem>>, vector<1x128xf32>
    %29 = vector.broadcast %28 : vector<1x128xf32> to vector<8x128xf32>
    %30 = arith.addf %27, %29 : vector<8x128xf32>
    %c0_23 = arith.constant 0 : index
    %c0_24 = arith.constant 0 : index
    %31 = vector.load %arg10[%c0_23, %c0_24] : memref<8x128xf32, #tpu.memory_space<vmem>>, vector<8x128xf32>
    tpu.vector_store %arg10[%c0_23, %c0_24], %30 {strides = array<i32>} : memref<8x128xf32, #tpu.memory_space<vmem>>, vector<8x128xf32>,
    return
  }
  func.func @transform_0(%arg0: i32) -> (i32, i32) {
    %c0_i32 = arith.constant 0 : i32
    %c0_i32_0 = arith.constant 0 : i32
    return %arg0, %c0_i32 : i32, i32
  }
  func.func @transform_1(%arg0: i32) -> (i32, i32) {
    %c0_i32 = arith.constant 0 : i32
    %c0_i32_0 = arith.constant 0 : i32
    %c0_i32_1 = arith.constant 0 : i32
    return %c0_i32, %c0_i32_0 : i32, i32
  }
  func.func @transform_2(%arg0: i32) -> (i32, i32) {
    %c0_i32 = arith.constant 0 : i32
    %c0_i32_0 = arith.constant 0 : i32
    %c0_i32_1 = arith.constant 0 : i32
    return %c0_i32, %c0_i32_0 : i32, i32
  }
  func.func @transform_3(%arg0: i32) -> (i32, i32) {
    %c0_i32 = arith.constant 0 : i32
    %c0_i32_0 = arith.constant 0 : i32
    %c0_i32_1 = arith.constant 0 : i32
    return %c0_i32, %c0_i32_0 : i32, i32
  }
  func.func @transform_4(%arg0: i32) -> (i32, i32) {
    %c0_i32 = arith.constant 0 : i32
    %c0_i32_0 = arith.constant 0 : i32
    %c0_i32_1 = arith.constant 0 : i32
    return %c0_i32, %c0_i32_0 : i32, i32
  }
  func.func @transform_5(%arg0: i32) -> (i32, i32) {
    %c0_i32 = arith.constant 0 : i32
    %c0_i32_0 = arith.constant 0 : i32
    %c0_i32_1 = arith.constant 0 : i32
    return %c0_i32, %c0_i32_0 : i32, i32
  }
  func.func @transform_6(%arg0: i32) -> (i32, i32) {
    %c0_i32 = arith.constant 0 : i32
    %c0_i32_0 = arith.constant 0 : i32
    %c0_i32_1 = arith.constant 0 : i32
    return %c0_i32, %c0_i32_0 : i32, i32
  }
  func.func @transform_7(%arg0: i32) -> (i32, i32) {
    %c0_i32 = arith.constant 0 : i32
    %c0_i32_0 = arith.constant 0 : i32
    %c0_i32_1 = arith.constant 0 : i32
    return %c0_i32, %c0_i32_0 : i32, i32
  }
  func.func @transform_8(%arg0: i32) -> (i32, i32) {
    %c0_i32 = arith.constant 0 : i32
    %c0_i32_0 = arith.constant 0 : i32
    %c0_i32_1 = arith.constant 0 : i32
    return %c0_i32, %c0_i32_0 : i32, i32
  }
  func.func @transform_9(%arg0: i32) -> (i32, i32) {
    %c0_i32 = arith.constant 0 : i32
    %c0_i32_0 = arith.constant 0 : i32
    return %arg0, %c0_i32 : i32, i32
  }
}

</mosaic_0001>

<bundles_post_ra>
// kernel: tpu_custom_call.1
= control target key start
LH: loop header
LB: loop body
LE: loop exit
PB: predicated region body
PF: predicated region fallthrough
CT: control target
= control target key end

     0   :  { %s966_s0 = inlined_call_operand.vmem [shape: f32[32,16], index: 0, kind: input, shape index: {}]   ;;  %s967_s1 = inlined_call_operand.hbm [shape: bf16[16,32], index: 1, kind: input, shape index: {}]   ;;  %s968_s2 = inlined_call_operand.vmem [shape: f32[1,32], index: 2, kind: input, shape index: {}]   ;;  %s969_s3 = inlined_call_operand.vmem [shape: bf16[32,32], index: 3, kind: input, shape index: {}]   ;;  %s970_s4 = inlined_call_operand.vmem [shape: f32[1,32], index: 4, kind: input, shape index: {}]   ;;  %s971_s5 = inlined_call_operand.vmem [shape: bf16[32,32], index: 5, kind: input, shape index: {}]   ;;  %s972_s6 = inlined_call_operand.vmem [shape: f32[1,32], index: 6, kind: input, shape index: {}]   ;;  %s973_s7 = inlined_call_operand.vmem [shape: bf16[32,128], index: 7, kind: input, shape index: {}]   ;;  %s974_s8 = inlined_call_operand.vmem [shape: f32[1,128], index: 8, kind: input, shape index: {}]   ;;  %s975_s9 = inlined_call_operand.hbm [shape: f32[32,128], index: 9, kind: output, shape index: {}]  }
   0x1   :  { %976 = sst [smem:[#allocation8_spill]] %s966_s0 }
   0x2   :  { %14 = vsyncpa [#allocation3], 0 }
   0x3   :  { %15 = vsyncpa [#allocation4], 0 }
   0x4   :  { %17 = vsyncpa [#allocation4 + $0x1], 0  ;;  %s838_s30 = smov 0   ;;  %s840_s10 = smov 0  }
   0x5   :  { %s842_s11 = smov 0   ;;  %s844_s12 = smov 0  }
   0x6 LB: > { %s859_s13 = sadd.s32 4294967295, %s783_s12   ;;  %s580_s14 = sadd.s32 4294967294, %s783_s12   ;;  %s783_s12 = sphi %s844_s12, %s983_s12   ;;  %s779_s11 = sphi %s842_s11, %s982_s11   ;;  %s775_s10 = sphi %s840_s10, %s981_s10   ;;  %s771_s30 = sphi %s838_s30, %s980_s30  }
   0x7   : > { %s863_s15 = sadd.s32 1, %s783_s12   ;;  %s224_s16 = sadd.s32 1, %s779_s11 }
   0x8   : > { %s221_s17 = ssub.s32 %s783_s12, %s863_s15  ;;  %p234_p0 = scmp.ne.s32.totalorder %s779_s11, %s775_s10 }
   0x9   : > { %p222_p1 = scmp.eq.s32.totalorder %s221_s17, 0  ;;  %p235_p2 = scmp.eq.s32.totalorder %s859_s13, 3 }
   0xa   : > { %p240_p3 = scmp.ne.s32.totalorder %s775_s10, %s771_s30  ;;  %p241_p4 = scmp.eq.s32.totalorder %s580_s14, 3 }
   0xb   : > { %s874_s18 = scalar_select %p222_p1, %s779_s11, %s224_s16  }
   0xc   : > { %p876_p5 = por %p235_p2, %p234_p0  ;;  %p880_p6 = por %p241_p4, %p240_p3 }
   0xd   : > { %p581_p7 = scmp.ge.s32.totalorder %s783_s12, 1  ;;  %p248_p8 = scmp.lt.s32.totalorder %s783_s12, 5 }
   0xe   : > { %p645_p9 = scmp.eq.s32.totalorder %s859_s13, 0  ;;  %s259_s23 = sshll.u32 %s967_s1, 4  ;;  %s260_s23 = int_to_ptr.hbm [resolvable:$true] %s259_s23 }
   0xf   : > { %p249_p10 = pnand %p581_p7, %p248_p8  ;;  %s785_s24 = smov [#allocation2]  }
  0x10   : > { %s261_s25 = sshll.u32 %s785_s24, 4  ;;  %s786_s26 = smov 64   ;;  %s262_s25 = int_to_ptr.vmem [resolvable:$true] %s261_s25 }
  0x11   : > { %p637_p11 = pneg %p249_p10  ;;  %s787_s27 = smov 4  }
  0x12   : > { %305 = sbr.rel (%p249_p10) target bundleno = 576 (0x240), region = 56 }
  0x13   : > { %p638_p12 = pnand %p645_p9, %p637_p11 }
  0x15   : > { %640 = dma.hbm_to_vmem [thread:$0]  (!%p638_p12), %s260_s23, 128, %s262_s25, [#allocation3], %s786_s26, %s786_s26, %s787_s27  }
  0x17   : > { %762 = dma.done.wait (%p645_p9), [#allocation3], 128  }
  0x18   : > { %764 = vsyncadd (%p645_p9), [#allocation3], 4294967168  ;;  %p341_p13 = scmp.lt.s32.totalorder %s859_s13, 3  ;;  %s979_s0 = sld [smem:[#allocation8_spill]]  ;;  %v624_v0 = vld [vmem:[#allocation2] sm:$0xff]  ;;  %vm360_vm0 = vcmask 130048  }
  0x19   : > { %371 = vmatpush.bf16.msra.mxu0 %v624_v0  ;;  %v626_v3 = vld [vmem:[%s969_s3 + $0x8] sm:$0xff]  ;;  %v625_v4 = vld [vmem:[%s969_s3] sm:$0xff]  ;;  %vm399_vm1 = vcmask 261120   ;;  %s338_s27 = sand.u32 1, %s775_s10   ;;  %s737_s16 = scalar_lea.hbm %s975_s9, 32 }
  0x1a   : > { %s342_s28 = scalar_select %p341_p13, %s859_s13, 3  ;;  %409 = vmatpush.bf16.msra.mxu1 %v626_v3  ;;  %v683_v5 = vld [vmem:[%s968_s2] ss:$0 sm:$0xff]  ;;  %v628_v11 = vld [vmem:[%s971_s5 + $0x8] sm:$0xff] }
  0x1b   : > { %447 = vmatpush.bf16.msra.mxu2 %v628_v11  ;;  %v627_v12 = vld [vmem:[%s971_s5] sm:$0xff]  ;;  %v630_v19 = vld [vmem:[%s973_s7 + $0x8] sm:$0xff]  ;;  %s494_s26 = scalar_lea.sflag [#allocation4], %s338_s27 }
  0x1c   : > { %s587_s29 = sshll.u32 %s342_s28, 3  ;;  %v684_v13 = vld [vmem:[%s970_s4] ss:$0 sm:$0xff]  ;;  %485 = vmatpush.bf16.msra.mxu3 %v630_v19  ;;  %s621_s28 = sshll.u32 %s859_s13, 3 }
  0x1d   : > { %v629_v20 = vld [vmem:[%s973_s7] sm:$0xff] }
  0x1e   : > { %s344_s17 = scalar_lea.vmem %s979_s0, %s587_s29  ;;  %410 = vmatpush.bf16.msra.mxu1 %v625_v4  ;;  %v685_v21 = vld [vmem:[%s972_s6] ss:$0 sm:$0xff]  ;;  %s586_s29 = sshll.u32 %s338_s27, 3 }
  0x1f   : > { %v346_v1 = vld [vmem:[%s344_s17] sm:$0xff]  ;;  %448 = vmatpush.bf16.msra.mxu2 %v627_v12  ;;  %s504_s17 = scalar_lea.hbm %s975_s9, %s621_s28  ;;  %s340_s23 = scalar_lea.vmem [#allocation5], %s586_s29 }
  0x20   : > { %v347_v2 = vpack.c.bf16 %v346_v1, %v346_v1  ;;  %486 = vmatpush.bf16.msra.mxu3 %v629_v20  ;;  %v686_v27 = vld [vmem:[%s974_s8] ss:$0 sm:$0xff]  ;;  %s506_s24 = sshll.u32 %s340_s23, 4  ;;  %s508_s25 = sshll.u32 %s504_s17, 4  ;;  %s507_s24 = int_to_ptr.vmem [resolvable:$true] %s506_s24  ;;  %s509_s25 = int_to_ptr.hbm [resolvable:$true] %s508_s25 }
  0x21   : > { %s731_s13 = sshra.s32 %s509_s25, 4  ;;  %s732_s13 = int_to_ptr.hbm [resolvable:$true] %s731_s13 }
  0x22   : > { %592 = vmatmul.msk.bf16.vlgmr.msra.gmra.mxu0 %vm360_vm0, %v347_v2  ;;  %s733_s0 = scalar_lea.hbm %s732_s13, 8  ;;  %p738_p3 = scmp.lt.s32.totalorder %s732_s13, %s975_s9 }
  0x23   : > { %p734_p0 = scmp.ne.s32.totalorder %s732_s13, %s733_s0  ;;  %p739_p4 = scmp.lt.s32.totalorder %s737_s16, %s733_s0 }
  0x25   : > { %p735_p1 = pnand %p734_p0, %p876_p5  ;;  %p740_p7 = por %p739_p4, %p738_p3 }
  0x27   : > { %p736_p2 = pneg %p735_p1 }
  0x29   : > { %p741_p8 = pnand %p740_p7, %p736_p2 }
  0x9f   : > { %v373_v6 = vpop.f32.mrf.mxu0 }
  0xa0   : > { %v374_v7 = vadd.f32 %v683_v5, %v373_v6 }
  0xa2   : > { %v377_v8 = vmax.f32 %v374_v7, 0.0 }
  0xa4   : > { %v378_v9 = vpack.c.bf16 %v377_v8, %v377_v8 }
  0xa6   : > { %601 = vmatmul.msk.bf16.vlgmr.msra.gmra.mxu1 %vm399_vm1, %v378_v9 }
  0xa7   : > { %v375_v10 = vpop.f32.mrf.mxu0 }
 0x123   : > { %v412_v14 = vpop.f32.mrf.mxu1 }
 0x124   : > { %v413_v15 = vadd.f32 %v684_v13, %v412_v14 }
 0x126   : > { %v416_v16 = vmax.f32 %v413_v15, 0.0 }
 0x128   : > { %v417_v17 = vpack.c.bf16 %v416_v16, %v416_v16 }
 0x12a   : > { %610 = vmatmul.msk.bf16.vlgmr.msra.gmra.mxu2 %vm399_vm1, %v417_v17 }
 0x12b   : > { %v414_v18 = vpop.f32.mrf.mxu1 }
 0x1ad   : > { %v450_v22 = vpop.f32.mrf.mxu2 }
 0x1ae   : > { %v451_v23 = vadd.f32 %v685_v21, %v450_v22 }
 0x1b0   : > { %v454_v24 = vmax.f32 %v451_v23, 0.0 }
 0x1b2   : > { %v455_v25 = vpack.c.bf16 %v454_v24, %v454_v24 }
 0x1b4   : > { %619 = vmatmul.msk.bf16.vlgmr.msra.gmra.mxu3 %vm399_vm1, %v455_v25 }
 0x1b5   : > { %v452_v26 = vpop.f32.mrf.mxu2 }
 0x237   : > { %v488_v28 = vpop.f32.mrf.mxu3 }
 0x238   : > { %v489_v29 = vadd.f32 %v686_v27, %v488_v28 }
 0x23a   : > { %492 = vst [vmem:[%s340_s23] sm:$0xff] %v489_v29 }
 0x23b   : > { %744 = shalt.err (!%p741_p8)
}
 0x23c   : > { %635 = dma.vmem_to_hbm [thread:$0]  (%p876_p5), %s507_s24, 128, %s509_s25, %s494_s26  }
 0x23f   : > { %v490_v30 = vpop.f32.mrf.mxu3 }
 0x240 PF: > { %p647_p9 = scmp.ge.s32.totalorder %s783_s12, 2  ;;  %s520_s27 = sand.u32 1, %s771_s30  }
 0x241   : > { %s521_s17 = scalar_lea.sflag [#allocation4], %s520_s27 }
 0x242   : > { %p642_p10 = pnand %p647_p9, %p880_p6 }
 0x244   : > { %p643_p11 = pneg %p642_p10 }
 0x246   : > { %766 = dma.done.wait (%p643_p11), %s521_s17, 128  }
 0x247   : > { %768 = vsyncadd (%p643_p11), %s521_s17, 4294967168  ;;  %p20_p12 = scmp.ge.s32.totalorder %s863_s15, 6   ;;  %s980_s30 = smov %s775_s10 }
 0x248   : > { %s981_s10 = smov %s779_s11  ;;  %s982_s11 = smov %s874_s18 }
 0x249   : > { %s983_s12 = smov %s863_s15  ;;  %22 = sbr.rel (!%p20_p12) target bundleno = 6 (0x6), region = 96 }
 0x24e   :  { %527 = vsyncpa [#allocation3], 1 }
 0x24f   :  { %529 = vsyncpa [#allocation3 + $0x1], 1 }
 0x250   :  { %530 = vsyncpa [#allocation4], 1 }
 0x251   :  { %532 = vsyncpa [#allocation4 + $0x1], 1 }

</bundles_post_ra>
